<compile_context>
chip_gen: v7x
topology: tpu7x:2x2x1
jax: 0.10.0
libtpu: 0.0.40
codegen_flags: <defaults>
</compile_context>

<pallas_src>
import jax
import jax.numpy as jnp
from jax import lax
from jax.experimental import pallas as pl
from jax.experimental.pallas import tpu as pltpu


def mapper_kernel(tok_ref, vecs_ref, w1_ref, b1_ref, w2_ref, b2_ref, out_ref):
    """One batch tile: one-hot-counts embedding mean -> MLP -> L2 normalize."""
    tile_b, seq_len = tok_ref.shape
    vocab = vecs_ref.shape[0]

    tok = tok_ref[...]                                     # (TB, L) int32, VMEM

    # ---- counts[b, v] = #{l : tokens[b, l] == v}  (L VPU compares) ---------
    vocab_iota = lax.broadcasted_iota(jnp.int32, (tile_b, vocab), 1)
    counts = jnp.zeros((tile_b, vocab), jnp.float32)
    for l in range(seq_len):                               # L static & small
        counts = counts + (tok[:, l:l + 1] == vocab_iota).astype(jnp.float32)

    # n_words counts tokens > 0 only; token 0 (padding) still contributes its
    # embedding to the sum — exactly like the PyTorch reference.
    n_words = jnp.sum((tok > 0).astype(jnp.float32), axis=1, keepdims=True) + 1e-10

    # ---- sentences = Embedding(tokens).sum(1) / n_words  (one MXU matmul) --
    sent = jnp.dot(counts, vecs_ref[...], preferred_element_type=jnp.float32)
    sent = sent / n_words                                  # (TB, D)

    # ---- fc: Linear(+folded BN) -> ReLU -> (Dropout = id) -> Linear --------
    h = jnp.dot(sent, w1_ref[...], preferred_element_type=jnp.float32) + b1_ref[...]
    h = jnp.maximum(h, 0.0)
    y = jnp.dot(h, w2_ref[...], preferred_element_type=jnp.float32) + b2_ref[...]
    # Padded output columns have zero weight/bias -> y[:, O:] == 0, so the L2
    # norm below is unaffected by the lane padding.

    # ---- F.normalize: y / max(||y||_2, 1e-12); 1e-24 == (1e-12)^2 in f32 ---
    ssq = jnp.sum(y * y, axis=1, keepdims=True)
    out_ref[...] = y * lax.rsqrt(jnp.maximum(ssq, 1e-24))


def prepare_params(params, eps=1e-5, lane=128):
    """Fold eval-mode BatchNorm1d into the first Linear and pad the second
    Linear to a lane-dense (multiple-of-128) output width. Call ONCE offline."""
    scale = params["gamma"] / jnp.sqrt(params["rvar"] + eps)        # (1, H)
    w1 = params["w1"] * scale                                       # (D, H)
    b1 = (params["b1"] - params["rmean"]) * scale + params["beta"]  # (1, H)

    out_dim = params["w2"].shape[1]
    o_pad = pl.cdiv(out_dim, lane) * lane
    w2 = jnp.pad(params["w2"], ((0, 0), (0, o_pad - out_dim)))
    b2 = jnp.pad(params["b2"], ((0, 0), (0, o_pad - out_dim)))
    return {"w1": w1, "b1": b1, "w2": w2, "b2": b2, "out_dim": out_dim}


def _default_tile_b(batch):
    # 256 fills the MXU M dim on v6e/v7x; 128 matches v5e's 4x128^2 MXU.
    for cand in (256, 128, 64, 32, 16, 8):
        if batch % cand == 0:
            return cand
    return batch


def mapper_forward(tokens, vecs, prepared, *, tile_b=None):
    """tokens: (B, L) int32, vecs: (V, D) f32, prepared: prepare_params(...)."""
    B, L = tokens.shape
    V, D = vecs.shape
    H = prepared["w1"].shape[1]
    O_pad = prepared["w2"].shape[1]
    O = prepared["out_dim"]

    if tile_b is None:
        tile_b = _default_tile_b(B)
    assert B % tile_b == 0, "pad batch to a multiple of tile_b"
    grid = (B // tile_b,)

    def resident(shape):
        # Full-extent weight / table blocks, constant index across the grid.
        return pl.BlockSpec(shape, lambda i: (0,) * len(shape))

    out_padded = pl.pallas_call(
        mapper_kernel,
        out_shape=jax.ShapeDtypeStruct((B, O_pad), jnp.float32),
        grid=grid,
        in_specs=[
            pl.BlockSpec((tile_b, L), lambda i: (i, 0)),   # tokens, per tile
            resident((V, D)),                              # embedding table
            resident((D, H)),                              # w1 (BN folded)
            resident((1, H)),                              # b1 (BN folded)
            resident((H, O_pad)),                          # w2 (lane padded)
            resident((1, O_pad)),                          # b2 (lane padded)
        ],
        out_specs=pl.BlockSpec((tile_b, O_pad), lambda i: (i, 0)),
        compiler_params=pltpu.CompilerParams(
            dimension_semantics=("parallel",),             # megacore on v7x
            # 48 MiB: leaves headroom on v7x (64 MiB physical per TC); raise
            # toward ~96 MiB on v5e/v6e only if the table needs it.
            vmem_limit_bytes=48 * 1024 * 1024,
        ),
    )(tokens, vecs, prepared["w1"], prepared["b1"], prepared["w2"], prepared["b2"])

    return out_padded[:, :O]


def reference_forward(tokens, vecs, params):
    """Plain-JAX reference with un-folded BatchNorm (matches the PyTorch spec)."""
    words = jnp.take(vecs, tokens, axis=0)
    n_words = jnp.sum((tokens > 0).astype(jnp.float32), axis=1) + 1e-10
    sentences = jnp.sum(words, axis=1) / n_words[:, None]
    h = sentences @ params["w1"] + params["b1"]
    h = (h - params["rmean"]) * params["gamma"] / jnp.sqrt(params["rvar"] + 1e-5) \
        + params["beta"]
    h = jnp.maximum(h, 0.0)
    y = h @ params["w2"] + params["b2"]
    norm = jnp.linalg.norm(y, axis=1, keepdims=True)
    return y / jnp.maximum(norm, 1e-12)


if __name__ == "__main__":
    # Small shapes consistent with the module.
    B, L = 16, 8                # batch, tokens per sentence
    V, D = 64, 32               # vocab (n_tokens), token_dim == feat_dim
    H, O = 32, 16               # hidden_dim, out_dim
    TILE_B = 8                  # 2 grid steps to exercise batch tiling

    key = jax.random.PRNGKey(0)
    k_vec, k_tok, k_w1, k_b1, k_w2, k_b2 = jax.random.split(key, 6)

    vecs = jax.random.normal(k_vec, (V, D), dtype=jnp.float32)
    tokens = jax.random.randint(k_tok, (B, L), 0, V, dtype=jnp.int32)

    params = {
        # Linear(D, H)
        "w1": jax.random.uniform(k_w1, (D, H), jnp.float32, -1.0, 1.0) / jnp.sqrt(D),
        "b1": jax.random.uniform(k_b1, (1, H), jnp.float32, -1.0, 1.0) / jnp.sqrt(D),
        # BatchNorm1d(H) fresh-module state (eval mode).
        "gamma": jnp.ones((1, H), jnp.float32),
        "beta": jnp.zeros((1, H), jnp.float32),
        "rmean": jnp.zeros((1, H), jnp.float32),
        "rvar": jnp.ones((1, H), jnp.float32),
        # Linear(H, O)
        "w2": jax.random.uniform(k_w2, (H, O), jnp.float32, -1.0, 1.0) / jnp.sqrt(H),
        "b2": jax.random.uniform(k_b2, (1, O), jnp.float32, -1.0, 1.0) / jnp.sqrt(H),
    }

    # Fold BatchNorm + pad Linear2 to lane-dense width once (param-prep time).
    prepared = prepare_params(params)
    prepared = {k: (jax.block_until_ready(v) if isinstance(v, jax.Array) else v)
                for k, v in prepared.items()}

    out = jax.block_until_ready(mapper_forward(tokens, vecs, prepared, tile_b=TILE_B))
    ref = reference_forward(tokens, vecs, params)

    assert out.shape == (B, O)
    assert jnp.allclose(out, ref, atol=2e-5, rtol=2e-5), "mismatch vs reference"
    print("KERNEL_OK")
</pallas_src>

<mosaic_0001>
module attributes {stable_mosaic.version = 11 : i64} {
  func.func @mapper_kernel(%arg0: i32, %arg1: memref<8x8xi32, #tpu.memory_space<vmem>>, %arg2: memref<64x32xf32, #tpu.memory_space<vmem>>, %arg3: memref<32x32xf32, #tpu.memory_space<vmem>>, %arg4: memref<1x32xf32, #tpu.memory_space<vmem>>, %arg5: memref<32x128xf32, #tpu.memory_space<vmem>>, %arg6: memref<1x128xf32, #tpu.memory_space<vmem>>, %arg7: memref<8x128xf32, #tpu.memory_space<vmem>>) attributes {dimension_semantics = [#tpu.dimension_semantics<parallel>], iteration_bounds = array<i64: 2>, scalar_prefetch = 0 : i64, scratch_operands = 0 : i64, tpu.core_type = #tpu.core_type<tc>, window_params = [{transform_indices = @transform_0, window_bounds = array<i64: 8, 8>}, {pipeline_mode = #tpu.pipeline_mode<synchronous>, transform_indices = @transform_1, window_bounds = array<i64: 64, 32>}, {pipeline_mode = #tpu.pipeline_mode<synchronous>, transform_indices = @transform_2, window_bounds = array<i64: 32, 32>}, {pipeline_mode = #tpu.pipeline_mode<synchronous>, transform_indices = @transform_3, window_bounds = array<i64: 1, 32>}, {pipeline_mode = #tpu.pipeline_mode<synchronous>, transform_indices = @transform_4, window_bounds = array<i64: 32, 128>}, {pipeline_mode = #tpu.pipeline_mode<synchronous>, transform_indices = @transform_5, window_bounds = array<i64: 1, 128>}, {transform_indices = @transform_6, window_bounds = array<i64: 8, 128>}]} {
    %c0 = arith.constant 0 : index
    %c0_0 = arith.constant 0 : index
    %0 = vector.load %arg1[%c0, %c0_0] : memref<8x8xi32, #tpu.memory_space<vmem>>, vector<8x8xi32>
    %1 = tpu.iota {dimensions = array<i32: 1>} : vector<8x64xi32>
    %cst = arith.constant 0.000000e+00 : f32
    %2 = vector.broadcast %cst : f32 to vector<8x64xf32>
    %3 = vector.extract_strided_slice %0 {offsets = [0, 0], sizes = [8, 1], strides = [1, 1]} : vector<8x8xi32> to vector<8x1xi32>
    %4 = vector.broadcast %3 : vector<8x1xi32> to vector<8x64xi32>
    %5 = arith.cmpi eq, %4, %1 : vector<8x64xi32>
    %6 = arith.extui %5 : vector<8x64xi1> to vector<8x64xi32>
    %7 = arith.sitofp %6 : vector<8x64xi32> to vector<8x64xf32>
    %8 = arith.addf %2, %7 : vector<8x64xf32>
    %9 = vector.extract_strided_slice %0 {offsets = [0, 1], sizes = [8, 1], strides = [1, 1]} : vector<8x8xi32> to vector<8x1xi32>
    %10 = vector.broadcast %9 : vector<8x1xi32> to vector<8x64xi32>
    %11 = arith.cmpi eq, %10, %1 : vector<8x64xi32>
    %12 = arith.extui %11 : vector<8x64xi1> to vector<8x64xi32>
    %13 = arith.sitofp %12 : vector<8x64xi32> to vector<8x64xf32>
    %14 = arith.addf %8, %13 : vector<8x64xf32>
    %15 = vector.extract_strided_slice %0 {offsets = [0, 2], sizes = [8, 1], strides = [1, 1]} : vector<8x8xi32> to vector<8x1xi32>
    %16 = vector.broadcast %15 : vector<8x1xi32> to vector<8x64xi32>
    %17 = arith.cmpi eq, %16, %1 : vector<8x64xi32>
    %18 = arith.extui %17 : vector<8x64xi1> to vector<8x64xi32>
    %19 = arith.sitofp %18 : vector<8x64xi32> to vector<8x64xf32>
    %20 = arith.addf %14, %19 : vector<8x64xf32>
    %21 = vector.extract_strided_slice %0 {offsets = [0, 3], sizes = [8, 1], strides = [1, 1]} : vector<8x8xi32> to vector<8x1xi32>
    %22 = vector.broadcast %21 : vector<8x1xi32> to vector<8x64xi32>
    %23 = arith.cmpi eq, %22, %1 : vector<8x64xi32>
    %24 = arith.extui %23 : vector<8x64xi1> to vector<8x64xi32>
    %25 = arith.sitofp %24 : vector<8x64xi32> to vector<8x64xf32>
    %26 = arith.addf %20, %25 : vector<8x64xf32>
    %27 = vector.extract_strided_slice %0 {offsets = [0, 4], sizes = [8, 1], strides = [1, 1]} : vector<8x8xi32> to vector<8x1xi32>
    %28 = vector.broadcast %27 : vector<8x1xi32> to vector<8x64xi32>
    %29 = arith.cmpi eq, %28, %1 : vector<8x64xi32>
    %30 = arith.extui %29 : vector<8x64xi1> to vector<8x64xi32>
    %31 = arith.sitofp %30 : vector<8x64xi32> to vector<8x64xf32>
    %32 = arith.addf %26, %31 : vector<8x64xf32>
    %33 = vector.extract_strided_slice %0 {offsets = [0, 5], sizes = [8, 1], strides = [1, 1]} : vector<8x8xi32> to vector<8x1xi32>
    %34 = vector.broadcast %33 : vector<8x1xi32> to vector<8x64xi32>
    %35 = arith.cmpi eq, %34, %1 : vector<8x64xi32>
    %36 = arith.extui %35 : vector<8x64xi1> to vector<8x64xi32>
    %37 = arith.sitofp %36 : vector<8x64xi32> to vector<8x64xf32>
    %38 = arith.addf %32, %37 : vector<8x64xf32>
    %39 = vector.extract_strided_slice %0 {offsets = [0, 6], sizes = [8, 1], strides = [1, 1]} : vector<8x8xi32> to vector<8x1xi32>
    %40 = vector.broadcast %39 : vector<8x1xi32> to vector<8x64xi32>
    %41 = arith.cmpi eq, %40, %1 : vector<8x64xi32>
    %42 = arith.extui %41 : vector<8x64xi1> to vector<8x64xi32>
    %43 = arith.sitofp %42 : vector<8x64xi32> to vector<8x64xf32>
    %44 = arith.addf %38, %43 : vector<8x64xf32>
    %45 = vector.extract_strided_slice %0 {offsets = [0, 7], sizes = [8, 1], strides = [1, 1]} : vector<8x8xi32> to vector<8x1xi32>
    %46 = vector.broadcast %45 : vector<8x1xi32> to vector<8x64xi32>
    %47 = arith.cmpi eq, %46, %1 : vector<8x64xi32>
    %48 = arith.extui %47 : vector<8x64xi1> to vector<8x64xi32>
    %49 = arith.sitofp %48 : vector<8x64xi32> to vector<8x64xf32>
    %50 = arith.addf %44, %49 : vector<8x64xf32>
    %c0_i32 = arith.constant 0 : i32
    %51 = vector.broadcast %c0_i32 : i32 to vector<8x8xi32>
    %52 = arith.cmpi sgt, %0, %51 : vector<8x8xi32>
    %53 = arith.extui %52 : vector<8x8xi1> to vector<8x8xi32>
    %54 = arith.sitofp %53 : vector<8x8xi32> to vector<8x8xf32>
    %cst_1 = arith.constant dense<0.000000e+00> : vector<8xf32>
    %55 = vector.multi_reduction <add>, %54, %cst_1 [1] : vector<8x8xf32> to vector<8xf32>
    %56 = vector.shape_cast %55 : vector<8xf32> to vector<8x1xf32>
    %cst_2 = arith.constant 1.000000e-10 : f32
    %57 = vector.broadcast %cst_2 : f32 to vector<8x1xf32>
    %58 = arith.addf %56, %57 : vector<8x1xf32>
    %c0_3 = arith.constant 0 : index
    %c0_4 = arith.constant 0 : index
    %59 = vector.load %arg2[%c0_3, %c0_4] : memref<64x32xf32, #tpu.memory_space<vmem>>, vector<64x32xf32>
    %cst_5 = arith.constant dense<0.000000e+00> : vector<8x32xf32>
    %60 = tpu.matmul %50, %59, %cst_5 {dimension_numbers = #tpu.dot_dimension_numbers<[1], [0], [0], [1], [0, 0, 1, 1], [], []>} : vector<8x64xf32>, vector<64x32xf32>, vector<8x32xf32> -> vector<8x32xf32>
    %61 = vector.broadcast %58 : vector<8x1xf32> to vector<8x32xf32>
    %62 = arith.divf %60, %61 : vector<8x32xf32>
    %c0_6 = arith.constant 0 : index
    %c0_7 = arith.constant 0 : index
    %63 = vector.load %arg3[%c0_6, %c0_7] : memref<32x32xf32, #tpu.memory_space<vmem>>, vector<32x32xf32>
    %cst_8 = arith.constant dense<0.000000e+00> : vector<8x32xf32>
    %64 = tpu.matmul %62, %63, %cst_8 {dimension_numbers = #tpu.dot_dimension_numbers<[1], [0], [0], [1], [0, 0, 1, 1], [], []>} : vector<8x32xf32>, vector<32x32xf32>, vector<8x32xf32> -> vector<8x32xf32>
    %c0_9 = arith.constant 0 : index
    %c0_10 = arith.constant 0 : index
    %65 = vector.load %arg4[%c0_9, %c0_10] : memref<1x32xf32, #tpu.memory_space<vmem>>, vector<1x32xf32>
    %66 = vector.broadcast %65 : vector<1x32xf32> to vector<8x32xf32>
    %67 = arith.addf %64, %66 : vector<8x32xf32>
    %cst_11 = arith.constant 0.000000e+00 : f32
    %68 = vector.broadcast %cst_11 : f32 to vector<8x32xf32>
    %69 = arith.maximumf %67, %68 : vector<8x32xf32>
    %c0_12 = arith.constant 0 : index
    %c0_13 = arith.constant 0 : index
    %70 = vector.load %arg5[%c0_12, %c0_13] : memref<32x128xf32, #tpu.memory_space<vmem>>, vector<32x128xf32>
    %cst_14 = arith.constant dense<0.000000e+00> : vector<8x128xf32>
    %71 = tpu.matmul %69, %70, %cst_14 {dimension_numbers = #tpu.dot_dimension_numbers<[1], [0], [0], [1], [0, 0, 1, 1], [], []>} : vector<8x32xf32>, vector<32x128xf32>, vector<8x128xf32> -> vector<8x128xf32>
    %c0_15 = arith.constant 0 : index
    %c0_16 = arith.constant 0 : index
    %72 = vector.load %arg6[%c0_15, %c0_16] : memref<1x128xf32, #tpu.memory_space<vmem>>, vector<1x128xf32>
    %73 = vector.broadcast %72 : vector<1x128xf32> to vector<8x128xf32>
    %74 = arith.addf %71, %73 : vector<8x128xf32>
    %75 = arith.mulf %74, %74 : vector<8x128xf32>
    %cst_17 = arith.constant dense<0.000000e+00> : vector<8xf32>
    %76 = vector.multi_reduction <add>, %75, %cst_17 [1] : vector<8x128xf32> to vector<8xf32>
    %77 = vector.shape_cast %76 : vector<8xf32> to vector<8x1xf32>
    %cst_18 = arith.constant 1.000000e-24 : f32
    %78 = vector.broadcast %cst_18 : f32 to vector<8x1xf32>
    %79 = arith.maximumf %77, %78 : vector<8x1xf32>
    %80 = math.rsqrt %79 : vector<8x1xf32>
    %81 = vector.broadcast %80 : vector<8x1xf32> to vector<8x128xf32>
    %82 = arith.mulf %74, %81 : vector<8x128xf32>
    %c0_19 = arith.constant 0 : index
    %c0_20 = arith.constant 0 : index
    %83 = vector.load %arg7[%c0_19, %c0_20] : memref<8x128xf32, #tpu.memory_space<vmem>>, vector<8x128xf32>
    tpu.vector_store %arg7[%c0_19, %c0_20], %82 {strides = array<i32>} : memref<8x128xf32, #tpu.memory_space<vmem>>, vector<8x128xf32>,
    return
  }
  func.func @transform_0(%arg0: i32) -> (i32, i32) {
    %c0_i32 = arith.constant 0 : i32
    %c0_i32_0 = arith.constant 0 : i32
    return %arg0, %c0_i32 : i32, i32
  }
  func.func @transform_1(%arg0: i32) -> (i32, i32) {
    %c0_i32 = arith.constant 0 : i32
    %c0_i32_0 = arith.constant 0 : i32
    %c0_i32_1 = arith.constant 0 : i32
    return %c0_i32, %c0_i32_0 : i32, i32
  }
  func.func @transform_2(%arg0: i32) -> (i32, i32) {
    %c0_i32 = arith.constant 0 : i32
    %c0_i32_0 = arith.constant 0 : i32
    %c0_i32_1 = arith.constant 0 : i32
    return %c0_i32, %c0_i32_0 : i32, i32
  }
  func.func @transform_3(%arg0: i32) -> (i32, i32) {
    %c0_i32 = arith.constant 0 : i32
    %c0_i32_0 = arith.constant 0 : i32
    %c0_i32_1 = arith.constant 0 : i32
    return %c0_i32, %c0_i32_0 : i32, i32
  }
  func.func @transform_4(%arg0: i32) -> (i32, i32) {
    %c0_i32 = arith.constant 0 : i32
    %c0_i32_0 = arith.constant 0 : i32
    %c0_i32_1 = arith.constant 0 : i32
    return %c0_i32, %c0_i32_0 : i32, i32
  }
  func.func @transform_5(%arg0: i32) -> (i32, i32) {
    %c0_i32 = arith.constant 0 : i32
    %c0_i32_0 = arith.constant 0 : i32
    %c0_i32_1 = arith.constant 0 : i32
    return %c0_i32, %c0_i32_0 : i32, i32
  }
  func.func @transform_6(%arg0: i32) -> (i32, i32) {
    %c0_i32 = arith.constant 0 : i32
    %c0_i32_0 = arith.constant 0 : i32
    return %arg0, %c0_i32 : i32, i32
  }
}

</mosaic_0001>

<bundles_post_ra>
// kernel: tpu_custom_call.1
= control target key start
LH: loop header
LB: loop body
LE: loop exit
PB: predicated region body
PF: predicated region fallthrough
CT: control target
= control target key end

     0   :  { %11 = vsyncpa [#allocation3], 0  ;;  %s1109_s0 = inlined_call_operand.vmem [shape: s32[16,8], index: 0, kind: input, shape index: {}]   ;;  %s1110_s1 = inlined_call_operand.vmem [shape: f32[64,32], index: 1, kind: input, shape index: {}]   ;;  %s1111_s2 = inlined_call_operand.vmem [shape: f32[32,32], index: 2, kind: input, shape index: {}]   ;;  %s1112_s3 = inlined_call_operand.vmem [shape: f32[1,32], index: 3, kind: input, shape index: {}]   ;;  %s1113_s4 = inlined_call_operand.vmem [shape: f32[32,128], index: 4, kind: input, shape index: {}]   ;;  %s1114_s5 = inlined_call_operand.vmem [shape: f32[1,128], index: 5, kind: input, shape index: {}]   ;;  %s1115_s6 = inlined_call_operand.hbm [shape: f32[16,128], index: 6, kind: output, shape index: {}]  }
   0x1   :  { %13 = vsyncpa [#allocation3 + $0x1], 0  ;;  %s930_s21 = smov 0   ;;  %s932_s22 = smov 0  }
   0x2   :  { %s934_s23 = smov 0   ;;  %s936_s24 = smov 0  }
   0x3 LB: > { %s951_s25 = sadd.s32 4294967295, %s881_s24   ;;  %s648_s26 = sadd.s32 4294967294, %s881_s24   ;;  %s881_s24 = sphi %s936_s24, %s1121_s24   ;;  %s877_s23 = sphi %s934_s23, %s1120_s23   ;;  %s873_s22 = sphi %s932_s22, %s1119_s22   ;;  %s869_s21 = sphi %s930_s21, %s1118_s21  }
   0x4   : > { %s955_s27 = sadd.s32 1, %s881_s24   ;;  %s157_s28 = sadd.s32 1, %s877_s23 }
   0x5   : > { %s154_s29 = ssub.s32 %s881_s24, %s955_s27  ;;  %p167_p0 = scmp.ne.s32.totalorder %s877_s23, %s873_s22 }
   0x6   : > { %p155_p1 = scmp.eq.s32.totalorder %s154_s29, 0  ;;  %p168_p2 = scmp.eq.s32.totalorder %s951_s25, 1 }
   0x7   : > { %p173_p3 = scmp.ne.s32.totalorder %s873_s22, %s869_s21  ;;  %p174_p4 = scmp.eq.s32.totalorder %s648_s26, 1 }
   0x8   : > { %s966_s30 = scalar_select %p155_p1, %s877_s23, %s157_s28  }
   0x9   : > { %p968_p5 = por %p168_p2, %p167_p0  ;;  %p972_p6 = por %p174_p4, %p173_p3 }
   0xa   : > { %p651_p7 = scmp.ge.s32.totalorder %s881_s24, 1  ;;  %p214_p8 = scmp.lt.s32.totalorder %s881_s24, 3 }
   0xc   : > { %p215_p9 = pnand %p651_p7, %p214_p8 }
   0xd   : > { %p243_p10 = scmp.lt.s32.totalorder (!%p215_p9), %s951_s25, 1  ;;  %v883_v0 = vmov (!%p215_p9), 2   ;;  %v884_v1 = vmov (!%p215_p9), 0   ;;  %v885_v3 = vmov (!%p215_p9), 3   ;;  %v886_v4 = vmov (!%p215_p9), 1   ;;  %v314_v5 = vld [vmem:[%s1110_s1] sm:$0xff] (!%p215_p9) }
   0xe   : > { %218 = sbr.rel (%p215_p9) target bundleno = 995 (0x3e3), region = 44  ;;  %808 = vset.pattern.permute.xlu1 (!%p215_p9), %v883_v0  ;;  %806 = vset.pattern.permute.xlu0 (!%p215_p9), %v884_v1  ;;  %v315_v6 = vld [vmem:[%s1110_s1 + $0x8] sm:$0xff] (!%p215_p9)  ;;  %v887_v8 = vmov (!%p215_p9), 0.0|0.0   ;;  %v888_v9 = vmov (!%p215_p9), 4   ;;  %v889_v10 = vmov (!%p215_p9), 5   ;;  %v316_v11 = vld [vmem:[%s1110_s1 + $0x10] sm:$0xff] (!%p215_p9)  ;;  %v248_v28 = vlaneseq (!%p215_p9) }
   0xf   : > { %v733_v7 = vpack.c.bf16 (!%p215_p9), %v315_v6, %v314_v5  ;;  %732 = vmatprep.subr.bf16.mxu0 (!%p215_p9), %v887_v8  ;;  %744 = vmatprep.subr.bf16.mxu1 (!%p215_p9), %v887_v8  ;;  %v317_v12 = vld [vmem:[%s1110_s1 + $0x18] sm:$0xff] (!%p215_p9)  ;;  %v890_v14 = vmov (!%p215_p9), 6   ;;  %v318_v15 = vld [vmem:[%s1110_s1 + $0x20] sm:$0xff] (!%p215_p9)  ;;  %v319_v16 = vld [vmem:[%s1110_s1 + $0x28] sm:$0xff] (!%p215_p9)  ;;  %v891_v17 = vmov (!%p215_p9), 7   ;;  %vm892_vm0 = vmmov (!%p215_p9), 0  }
  0x10   : > { %v736_v13 = vpack.c.bf16 (!%p215_p9), %v317_v12, %v316_v11  ;;  %v739_v18 = vpack.c.bf16 (!%p215_p9), %v319_v16, %v318_v15  ;;  %v320_v19 = vld [vmem:[%s1110_s1 + $0x30] sm:$0xff] (!%p215_p9)  ;;  %v321_v20 = vld [vmem:[%s1110_s1 + $0x38] sm:$0xff] (!%p215_p9)  ;;  %v893_v22 = vmov (!%p215_p9), 0.0   ;;  %vm309_vm2 = vcmask (!%p215_p9), 64512   ;;  %v398_v25 = vld [vmem:[%s1111_s2] sm:$0xff] (!%p215_p9)  ;;  %s240_s20 = sand.u32 (!%p215_p9), 1, %s873_s22  }
  0x11   : > { %734 = vmatpush3.bf16.msra.mxu0 (!%p215_p9), %v733_v7  ;;  %v742_v21 = vpack.c.bf16 (!%p215_p9), %v321_v20, %v320_v19  ;;  %707 = vmatprep.mubr.msk.f32.mxu0 (!%p215_p9), %vm892_vm0, %v893_v22  ;;  %v399_v26 = vld [vmem:[%s1111_s2 + $0x8] sm:$0xff] (!%p215_p9)  ;;  %v249_v31 = vand.u32 (!%p215_p9), 127, %v248_v28  ;;  %vm322_vm11 = vcmask (!%p215_p9), 523264   ;;  %v400_v53 = vld [vmem:[%s1111_s2 + $0x10] sm:$0xff] (!%p215_p9)  ;;  %v401_v54 = vld [vmem:[%s1111_s2 + $0x18] sm:$0xff] (!%p215_p9)  ;;  %vm409_vm12 = vcmask (!%p215_p9), 261120  }
  0x12   : > { %735 = vmatprep.subr.bf16.mxu0 (!%p215_p9), %v887_v8  ;;  %718 = vmatprep.mubr.msk.f32.mxu1 (!%p215_p9), %vm892_vm0, %v893_v22  ;;  %v745_v27 = vpack.c.bf16 (!%p215_p9), %v399_v26, %v398_v25  ;;  %v748_v55 = vpack.c.bf16 (!%p215_p9), %v401_v54, %v400_v53  ;;  %v484_v58 = vld [vmem:[%s1113_s4] sm:$0xff] (!%p215_p9)  ;;  %v485_v59 = vld [vmem:[%s1113_s4 + $0x8] sm:$0xff] (!%p215_p9)  ;;  %v486_v1 = vld [vmem:[%s1113_s4 + $0x10] sm:$0xff] (!%p215_p9)  ;;  %s652_s26 = sshll.u32 (!%p215_p9), %s240_s20, 3  ;;  %s669_s28 = sshll.u32 (!%p215_p9), %s951_s25, 7 }
  0x13   : > { %v751_v62 = vpack.c.bf16 (!%p215_p9), %v485_v59, %v484_v58  ;;  %s242_s29 = scalar_lea.vmem (!%p215_p9), [#allocation2], %s652_s26  ;;  %s1067_s12 = scalar_lea.hbm (!%p215_p9), %s1115_s6, %s669_s28 }
  0x14   : > { %746 = vmatpush3.bf16.msra.mxu1 (!%p215_p9), %v745_v27 }
  0x15   : > { %s244_s9 = scalar_select %p243_p10, %s951_s25, 1  ;;  %737 = vmatpush3.bf16.msra.mxu0 %v736_v13  ;;  %747 = vmatprep.subr.bf16.mxu1 %v887_v8 }
  0x16   : > { %738 = vmatprep.subr.bf16.mxu0 %v887_v8  ;;  %s894_s25 = smov [#allocation2]  }
  0x17   : > { %s653_s10 = sshll.u32 %s244_s9, 3  ;;  %s589_s9 = sshll.u32 %s242_s29, 4  ;;  %s1069_s9 = int_to_ptr.vmem [resolvable:$true] %s589_s9 }
  0x18   : > { %s246_s13 = scalar_lea.vmem %s1109_s0, %s653_s10  ;;  %749 = vmatpush3.bf16.msra.mxu1 %v748_v55  ;;  %s819_s14 = scalar_lea.vmem %s1069_s9, 128 }
  0x19   : > { %v247_v2 = vld [vmem:[%s246_s13] sm:$0xff]  ;;  %740 = vmatpush3.bf16.msra.mxu0 %v739_v18  ;;  %750 = vmatprep.subr.bf16.mxu1 %v887_v8  ;;  %s576_s13 = scalar_lea.sflag [#allocation3], %s240_s20  ;;  %p820_p11 = scmp.ne.s32.totalorder %s1069_s9, %s819_s14 }
  0x1a   : > { %265 = vperm.xlu1 %808, %v247_v2   ;;  %251 = vperm.xlu0 %806, %v247_v2   ;;  %vm306_vm1 = vcmp.gt.s32.totalorder %v247_v2, 0  ;;  %s823_s15 = sshll.u32 %s894_s25, 4  ;;  %s824_s15 = int_to_ptr.vmem [resolvable:$false] %s823_s15 }
  0x1b   : > { %741 = vmatprep.subr.bf16.mxu0 %v887_v8  ;;  %v662_v23 = vsel %vm306_vm1, 1.0, %v893_v22  ;;  %p821_p12 = pnand %p820_p11, %p968_p5  ;;  %s825_s16 = scalar_lea.vmem %s824_s15, 256 }
  0x1c   : > { %v310_v24 = vsel %vm309_vm2, %v662_v23, 0.0  ;;  %p826_p0 = scmp.lt.s32.totalorder %s1069_s9, %s824_s15  ;;  %p827_p1 = scmp.lt.s32.totalorder %s825_s16, %s819_s14 }
  0x1d   : > { %743 = vmatpush3.bf16.msra.mxu0 %v742_v21  ;;  %p822_p13 = pneg %p821_p12 }
  0x1e   : > { %809 = vset.pattern.permute.xlu1 %v885_v3  ;;  %807 = vset.pattern.permute.xlu0 %v886_v4  ;;  %v664_v4 = vld [vmem:[%s1112_s3] ss:$0 sm:$0xff]  ;;  %p828_p2 = por %p827_p1, %p826_p0 }
  0x1f   : > { %272 = vperm.xlu1 %809, %v247_v2   ;;  %258 = vperm.xlu0 %807, %v247_v2  }
  0x20   : > { %p829_p3 = pnand %p828_p2, %p822_p13 }
  0x23   : > { %810 = vset.pattern.permute.xlu1 %v888_v9  ;;  %811 = vset.pattern.permute.xlu0 %v889_v10  ;;  %v666_v9 = vld [vmem:[%s1114_s5] ss:$0 sm:$0xff] }
  0x24   : > { %279 = vperm.xlu1 %810, %v247_v2   ;;  %286 = vperm.xlu0 %811, %v247_v2  }
  0x28   : > { %812 = vset.pattern.permute.xlu1 %v890_v14  ;;  %814 = vset.pattern.permute.xlu0 %v891_v17 }
  0x29   : > { %293 = vperm.xlu1 %812, %v247_v2  }
  0x2d   : > { %813 = vset.pattern.permute.xlu1 %v891_v17 }
  0x2e   : > { %300 = vperm.xlu1 %813, %v247_v2   ;;  %v487_v2 = vld [vmem:[%s1113_s4 + $0x18] sm:$0xff] }
  0x2f   : > { %v754_v3 = vpack.c.bf16 %v487_v2, %v486_v1 }
  0x43   : > { %311 = vadd.xlane.f32.xlu0 %v310_v24 }
  0x99   : > { %v266_v29 = vpop.permute.xlu1 %265  ;;  %v252_v30 = vpop.permute.xlu0 %251 }
  0x9a   : > { %vm253_vm3 = vcmp.eq.s32.totalorder %v252_v30, %v249_v31  ;;  %vm267_vm4 = vcmp.eq.s32.totalorder %v266_v29, %v249_v31 }
  0x9b   : > { %v654_v34 = vsel %vm253_vm3, 1.0, %v893_v22  ;;  %v656_v37 = vsel %vm267_vm4, 1.0, %v893_v22 }
  0x9e   : > { %v273_v32 = vpop.permute.xlu1 %272  ;;  %v259_v33 = vpop.permute.xlu0 %258 }
  0x9f   : > { %vm260_vm5 = vcmp.eq.s32.totalorder %v259_v33, %v249_v31  ;;  %vm274_vm6 = vcmp.eq.s32.totalorder %v273_v32, %v249_v31 }
  0xa0   : > { %v655_v35 = vsel %vm260_vm5, 1.0, %v893_v22  ;;  %v657_v41 = vsel %vm274_vm6, 1.0, %v893_v22 }
  0xa1   : > { %v263_v36 = vadd.f32 %v655_v35, %v654_v34 }
  0xa3   : > { %v270_v38 = vadd.f32 %v656_v37, %v263_v36  ;;  %v280_v39 = vpop.permute.xlu1 %279  ;;  %v287_v40 = vpop.permute.xlu0 %286 }
  0xa4   : > { %vm281_vm7 = vcmp.eq.s32.totalorder %v280_v39, %v249_v31  ;;  %vm288_vm8 = vcmp.eq.s32.totalorder %v287_v40, %v249_v31 }
  0xa5   : > { %v277_v42 = vadd.f32 %v657_v41, %v270_v38  ;;  %v658_v43 = vsel %vm281_vm7, 1.0, %v893_v22  ;;  %v659_v45 = vsel %vm288_vm8, 1.0, %v893_v22 }
  0xa7   : > { %v284_v44 = vadd.f32 %v658_v43, %v277_v42 }
  0xa8   : > { %v294_v46 = vpop.permute.xlu1 %293 }
  0xa9   : > { %vm295_vm9 = vcmp.eq.s32.totalorder %v294_v46, %v249_v31  ;;  %v291_v47 = vadd.f32 %v659_v45, %v284_v44 }
  0xaa   : > { %v660_v48 = vsel %vm295_vm9, 1.0, %v893_v22 }
  0xab   : > { %v298_v50 = vadd.f32 %v660_v48, %v291_v47 }
  0xad   : > { %v301_v49 = vpop.permute.xlu1 %300 }
  0xae   : > { %vm302_vm10 = vcmp.eq.s32.totalorder %v301_v49, %v249_v31 }
  0xaf   : > { %v661_v51 = vsel %vm302_vm10, 1.0, %v893_v22 }
  0xb0   : > { %v305_v52 = vadd.f32 %v661_v51, %v298_v50 }
  0xb2   : > { %708 = vmatmul.mubr.msk.f32.vlgmr.msra.gmra.mrb[0].mxu0 %vm322_vm11, %v305_v52 }
  0xd0   : > { %v312_v56 = vpop.xlane.xlu0 %311 }
  0xd1   : > { %v313_v57 = vadd.f32 1e-10, %v312_v56 }
  0xd3   : > { %815 = vrcp.f32 %v313_v57 }
  0xdd   : > { %v816_v60 = vpop.eup %815 }
 0x185   : > { %v392_v61 = vpop.f32.mrb[0].mxu0 }
 0x186   : > { %v397_v63 = vmul.f32 %v816_v60, %v392_v61  ;;  %v709_v0 = vpop.f32.mrb[1].mxu0 }
 0x188   : > { %719 = vmatmul.mubr.msk.f32.vlgmr.msra.gmra.mrb[0].mxu1 %vm409_vm12, %v397_v63 }
 0x189   : > { %752 = vmatpush3.bf16.msra.mxu1 %v751_v62  ;;  %729 = vmatprep.mubr.msk.f32.mxu1 %vm892_vm0, %v893_v22 }
 0x18a   : > { %753 = vmatprep.subr.bf16.mxu1 %v887_v8 }
 0x18d   : > { %755 = vmatpush3.bf16.msra.mxu1 %v754_v3 }
 0x25b   : > { %v479_v5 = vpop.f32.mrb[0].mxu1 }
 0x25c   : > { %v480_v6 = vadd.f32 %v664_v4, %v479_v5  ;;  %v720_v7 = vpop.f32.mrb[1].mxu1 }
 0x25e   : > { %v483_v8 = vmax.f32 %v480_v6, 0.0 }
 0x260   : > { %730 = vmatmul.mubr.msk.f32.vlgmr.msra.gmra.mrb[2].mxu1 %vm409_vm12, %v483_v8 }
 0x333   : > { %v564_v10 = vpop.f32.mrb[2].mxu1 }
 0x334   : > { %v565_v11 = vadd.f32 %v666_v9, %v564_v10  ;;  %v731_v12 = vpop.f32.mrb[3].mxu1 }
 0x336   : > { %v568_v13 = vmul.f32 %v565_v11, %v565_v11 }
 0x338   : > { %569 = vadd.xlane.f32.xlu1 %v568_v13 }
 0x3c5   : > { %v570_v14 = vpop.xlane.xlu1 %569 }
 0x3c6   : > { %v571_v15 = vmax.f32 %v570_v14, 1e-24 }
 0x3c8   : > { %817 = vrsqrt.f32 %v571_v15 }
 0x3d2   : > { %v818_v16 = vpop.eup %817 }
 0x3d3   : > { %v573_v17 = vmul.f32 %v818_v16, %v565_v11 }
 0x3d5   : > { %574 = vst [vmem:[%s242_s29] sm:$0xff] %v573_v17 }
 0x3d6   : > { %832 = shalt.err (!%p829_p3)
}
 0x3d7   : > { %s833_s17 = scalar_lea.hbm %s1067_s12, 128  ;;  %s837_s20 = scalar_lea.hbm %s1115_s6, 256 }
 0x3d8   : > { %p834_p4 = scmp.ne.s32.totalorder %s1067_s12, %s833_s17  ;;  %p838_p9 = scmp.lt.u32.totalorder %s1067_s12, %s1115_s6 }
 0x3d9   : > { %p839_p10 = scmp.lt.u32.totalorder %s837_s20, %s833_s17  ;;  %p841_p12 = scmp.lt.u32.totalorder %s833_s17, %s1067_s12 }
 0x3da   : > { %p835_p7 = pnand %p834_p4, %p968_p5 }
 0x3db   : > { %p840_p11 = por %p839_p10, %p838_p9 }
 0x3dc   : > { %p836_p8 = pneg %p835_p7 }
 0x3dd   : > { %p842_p13 = por %p841_p12, %p840_p11 }
 0x3df   : > { %p843_p0 = pnand %p842_p13, %p836_p8 }
 0x3e1   : > { %846 = shalt.err (!%p843_p0)
}
 0x3e2   : > { %756 = dma.vmem_to_hbm [thread:$0]  (%p968_p5), %s1069_s9, 128, %s1067_s12, %s576_s13  }
 0x3e3 PF: > { %p762_p1 = scmp.ge.s32.totalorder %s881_s24, 2  ;;  %s601_s29 = sand.u32 1, %s869_s21  }
 0x3e4   : > { %s602_s10 = scalar_lea.sflag [#allocation3], %s601_s29 }
 0x3e5   : > { %p759_p2 = pnand %p762_p1, %p972_p6 }
 0x3e7   : > { %864 = dma.done.wait (!%p759_p2), %s602_s10, 128  }
 0x3e8   : > { %866 = vsyncadd (!%p759_p2), %s602_s10, 4294967168  ;;  %p16_p3 = scmp.ge.s32.totalorder %s955_s27, 4   ;;  %s1118_s21 = smov %s873_s22 }
 0x3e9   : > { %s1119_s22 = smov %s877_s23  ;;  %s1120_s23 = smov %s966_s30 }
 0x3ea   : > { %s1121_s24 = smov %s955_s27  ;;  %18 = sbr.rel (!%p16_p3) target bundleno = 3 (0x3), region = 79 }
 0x3f1   :  { %607 = vsyncpa [#allocation3], 1 }
 0x3f2   :  { %609 = vsyncpa [#allocation3 + $0x1], 1 }

</bundles_post_ra>
